<compile_context>
chip_gen: v7x
topology: tpu7x:2x2x1
jax: 0.10.0
libtpu: 0.0.40
codegen_flags: <defaults>
</compile_context>

<pallas_src>
import jax
import jax.numpy as jnp
from jax.experimental import pallas as pl
from jax.experimental.pallas import tpu as pltpu

EPS = 1e-8
LANE = 128
SUBLANE = 8
_MiB = 1024 * 1024


def _round_up(x, m):
    return ((x + m - 1) // m) * m


def _chip_profile():
    """Best-effort TPU-generation detection; conservative defaults otherwise."""
    kind = ""
    try:
        kind = jax.devices()[0].device_kind.lower()
    except Exception:
        pass
    is_v7 = "v7" in kind
    is_v6 = "v6" in kind
    return {
        # v7x: faster HBM -> bigger blocks amortize per-grid-step overhead.
        "block_bytes": (4 * _MiB) if is_v7 else (2 * _MiB),
        # Only v7x has 2 TensorCores; elsewhere the grid is a serial loop.
        "two_tc": is_v7,
        # bf16 VPU exists on v6e/v7x; v5e (and unknown) upcast to f32.
        "bf16_vpu": is_v7 or is_v6,
    }


def _make_kernel(compute_dtype):
    def kernel(fw_ref, a_ref, b_ref, o_ref):
        # fw_ref: SMEM (2,) already ReLU6'd + normalized fusion weights (f32).
        # a_ref, b_ref, o_ref: VMEM tiles (2-D main path, 1-D fallback path).
        fw0 = fw_ref[0].astype(compute_dtype)
        fw1 = fw_ref[1].astype(compute_dtype)
        a = a_ref[...].astype(compute_dtype)
        b = b_ref[...].astype(compute_dtype)
        o_ref[...] = (fw0 * a + fw1 * b).astype(o_ref.dtype)
    return kernel


def _pick_lane_width(n):
    """Widest lane-dense width (multiple of 128) that divides n, else None."""
    for w in (2048, 1024, 512, 256, 128):
        if n % w == 0:
            return w
    return None


def adaptive_fusion(weights, similarity_scores, spatial_scores):
    """weights: (2,) f32 raw learnable params; similarity/spatial: same shape."""
    assert similarity_scores.shape == spatial_scores.shape
    assert similarity_scores.dtype == spatial_scores.dtype
    orig_shape = similarity_scores.shape
    dtype = similarity_scores.dtype
    itemsize = jnp.dtype(dtype).itemsize

    prof = _chip_profile()
    # Native bf16 compute only where the VPU supports it; f32 otherwise.
    if dtype == jnp.bfloat16 and prof["bf16_vpu"]:
        compute_dtype = jnp.bfloat16
    else:
        compute_dtype = jnp.float32

    # Hoisted scalar work: ReLU6 + eps-normalization of the 2-vector.
    w = jnp.clip(weights.astype(jnp.float32), 0.0, 6.0)
    fw = w / (jnp.sum(w) + EPS)  # shape (2,), f32

    a = similarity_scores.reshape(-1)
    b = spatial_scores.reshape(-1)
    n = a.shape[0]
    total_bytes = n * itemsize

    cost = pl.CostEstimate(
        flops=3 * n,
        transcendentals=0,
        bytes_accessed=3 * n * itemsize,
    )
    cparams = pltpu.CompilerParams(
        dimension_semantics=("parallel",),
        vmem_limit_bytes=32 * _MiB,
    )

    width = _pick_lane_width(n)

    if width is None:
        # 1-D fallback: element count not a multiple of 128.  Stream the flat
        # arrays directly; Pallas edge-masks the ragged last block (no pad,
        # no extra HBM traffic).
        block = prof["block_bytes"] // itemsize
        block = max(SUBLANE * LANE, (block // (SUBLANE * LANE)) * (SUBLANE * LANE))
        if block >= n:
            block = n          # block == full array dim -> always legal
            num_blocks = 1
        else:
            num_blocks = pl.cdiv(n, block)

        out_flat = pl.pallas_call(
            _make_kernel(compute_dtype),
            out_shape=jax.ShapeDtypeStruct((n,), dtype),
            grid_spec=pltpu.PrefetchScalarGridSpec(
                num_scalar_prefetch=1,  # normalized fw lands in SMEM
                grid=(num_blocks,),
                in_specs=[
                    pl.BlockSpec((block,), lambda i, fw: (i,)),
                    pl.BlockSpec((block,), lambda i, fw: (i,)),
                ],
                out_specs=pl.BlockSpec((block,), lambda i, fw: (i,)),
            ),
            compiler_params=cparams,
            cost_estimate=cost,
        )(fw, a, b)
        return out_flat.reshape(orig_shape)

    # Main path: lane-dense 2-D layout, zero-copy reshape.
    rows = n // width

    block_rows = prof["block_bytes"] // (width * itemsize)
    block_rows = max(SUBLANE, (block_rows // SUBLANE) * SUBLANE)
    if block_rows >= rows:
        block_rows = rows      # block == full array dim -> no masked stores
        num_blocks = 1
    else:
        num_blocks = pl.cdiv(rows, block_rows)

    # v7x only: keep both TensorCores busy when there is enough work.
    if prof["two_tc"] and total_bytes >= 4 * _MiB:
        if num_blocks < 2:
            block_rows = max(SUBLANE, _round_up(pl.cdiv(rows, 2), SUBLANE))
            num_blocks = pl.cdiv(rows, block_rows)
        elif num_blocks % 2 == 1:
            cand = max(SUBLANE, _round_up(pl.cdiv(rows, num_blocks + 1), SUBLANE))
            if cand < rows and pl.cdiv(rows, cand) % 2 == 0:
                block_rows = cand
                num_blocks = pl.cdiv(rows, cand)

    a2d = a.reshape(rows, width)
    b2d = b.reshape(rows, width)

    out2d = pl.pallas_call(
        _make_kernel(compute_dtype),
        out_shape=jax.ShapeDtypeStruct((rows, width), dtype),
        grid_spec=pltpu.PrefetchScalarGridSpec(
            num_scalar_prefetch=1,  # normalized fw lands in SMEM
            grid=(num_blocks,),
            in_specs=[
                pl.BlockSpec((block_rows, width), lambda i, fw: (i, 0)),
                pl.BlockSpec((block_rows, width), lambda i, fw: (i, 0)),
            ],
            out_specs=pl.BlockSpec((block_rows, width), lambda i, fw: (i, 0)),
        ),
        compiler_params=cparams,
        cost_estimate=cost,
    )(fw, a2d, b2d)

    return out2d.reshape(orig_shape)


def _reference(weights, a, b):
    w = jnp.clip(weights.astype(jnp.float32), 0.0, 6.0)
    fw = w / (jnp.sum(w) + EPS)
    return (fw[0] * a.astype(jnp.float32)
            + fw[1] * b.astype(jnp.float32)).astype(a.dtype)


if __name__ == "__main__":
    key = jax.random.PRNGKey(0)
    k1, k2 = jax.random.split(key)

    # NCHW inputs, small shapes consistent with the module.
    x_shape = (2, 4, 16, 16)
    similarity_scores = jax.random.normal(k1, x_shape, dtype=jnp.float32)
    spatial_scores = jax.random.normal(k2, x_shape, dtype=jnp.float32)

    # nn.Parameter(torch.ones(2)) -> deterministic init
    weights = jnp.ones((2,), dtype=jnp.float32)

    out = adaptive_fusion(weights, similarity_scores, spatial_scores)
    out = jax.block_until_ready(out)

    ref = _reference(weights, similarity_scores, spatial_scores)
    assert out.shape == x_shape and out.dtype == jnp.float32
    assert jnp.allclose(out, ref, atol=1e-6, rtol=1e-6)

    # Also exercise the 1-D ragged fallback path (n % 128 != 0).
    y_shape = (3, 5, 7, 11)
    a2 = jax.random.normal(k1, y_shape, dtype=jnp.float32)
    b2 = jax.random.normal(k2, y_shape, dtype=jnp.float32)
    out2 = jax.block_until_ready(adaptive_fusion(weights, a2, b2))
    assert jnp.allclose(out2, _reference(weights, a2, b2), atol=1e-6, rtol=1e-6)

    print("KERNEL_OK")
</pallas_src>

<mosaic_0001>
module attributes {stable_mosaic.version = 11 : i64} {
  func.func @kernel(%arg0: i32, %arg1: memref<2xf32, #tpu.memory_space<smem>>, %arg2: memref<1x2048xf32, #tpu.memory_space<vmem>>, %arg3: memref<1x2048xf32, #tpu.memory_space<vmem>>, %arg4: memref<1x2048xf32, #tpu.memory_space<vmem>>) attributes {dimension_semantics = [#tpu.dimension_semantics<parallel>], iteration_bounds = array<i64: 1>, scalar_prefetch = 1 : i64, scratch_operands = 0 : i64, tpu.core_type = #tpu.core_type<tc>, window_params = [{transform_indices = @transform_0, window_bounds = array<i64: 1, 2048>}, {transform_indices = @transform_1, window_bounds = array<i64: 1, 2048>}, {transform_indices = @transform_2, window_bounds = array<i64: 1, 2048>}]} {
    %c0 = arith.constant 0 : index
    %0 = memref.load %arg1[%c0] : memref<2xf32, #tpu.memory_space<smem>>
    %c1 = arith.constant 1 : index
    %1 = memref.load %arg1[%c1] : memref<2xf32, #tpu.memory_space<smem>>
    %c0_0 = arith.constant 0 : index
    %c0_1 = arith.constant 0 : index
    %2 = vector.load %arg2[%c0_0, %c0_1] : memref<1x2048xf32, #tpu.memory_space<vmem>>, vector<1x2048xf32>
    %c0_2 = arith.constant 0 : index
    %c0_3 = arith.constant 0 : index
    %3 = vector.load %arg3[%c0_2, %c0_3] : memref<1x2048xf32, #tpu.memory_space<vmem>>, vector<1x2048xf32>
    %4 = vector.broadcast %0 : f32 to vector<1x2048xf32>
    %5 = arith.mulf %4, %2 : vector<1x2048xf32>
    %6 = vector.broadcast %1 : f32 to vector<1x2048xf32>
    %7 = arith.mulf %6, %3 : vector<1x2048xf32>
    %8 = arith.addf %5, %7 : vector<1x2048xf32>
    %c0_4 = arith.constant 0 : index
    %c0_5 = arith.constant 0 : index
    %9 = vector.load %arg4[%c0_4, %c0_5] : memref<1x2048xf32, #tpu.memory_space<vmem>>, vector<1x2048xf32>
    tpu.vector_store %arg4[%c0_4, %c0_5], %8 {strides = array<i32>} : memref<1x2048xf32, #tpu.memory_space<vmem>>, vector<1x2048xf32>,
    return
  }
  func.func @transform_0(%arg0: i32, %arg1: memref<2xf32, #tpu.memory_space<smem>>) -> (i32, i32) {
    %c0_i32 = arith.constant 0 : i32
    %c0_i32_0 = arith.constant 0 : i32
    return %arg0, %c0_i32 : i32, i32
  }
  func.func @transform_1(%arg0: i32, %arg1: memref<2xf32, #tpu.memory_space<smem>>) -> (i32, i32) {
    %c0_i32 = arith.constant 0 : i32
    %c0_i32_0 = arith.constant 0 : i32
    return %arg0, %c0_i32 : i32, i32
  }
  func.func @transform_2(%arg0: i32, %arg1: memref<2xf32, #tpu.memory_space<smem>>) -> (i32, i32) {
    %c0_i32 = arith.constant 0 : i32
    %c0_i32_0 = arith.constant 0 : i32
    return %arg0, %c0_i32 : i32, i32
  }
}

</mosaic_0001>

<bundles_post_ra>
// kernel: tpu_custom_call.1
= control target key start
LH: loop header
LB: loop body
LE: loop exit
PB: predicated region body
PF: predicated region fallthrough
CT: control target
= control target key end

     0   :  { %s234_s0 = inlined_call_operand.hbm [shape: f32[2], index: 0, kind: input, shape index: {}]   ;;  %s235_s1 = inlined_call_operand.hbm [shape: f32[1,2048], index: 1, kind: input, shape index: {}]   ;;  %s236_s2 = inlined_call_operand.hbm [shape: f32[1,2048], index: 2, kind: input, shape index: {}]   ;;  %s237_s3 = inlined_call_operand.hbm [shape: f32[1,2048], index: 3, kind: output, shape index: {}]  }
   0x1   :  { %s78_s14 = scalar_lea.hbm %s234_s0, 16 }
   0x2   :  { %p79_p0 = scmp.ne.s32.totalorder %s234_s0, %s78_s14  ;;  %p82_p1 = scmp.lt.u32.totalorder %s78_s14, %s234_s0 }
   0x4   :  { %p84_p2 = pnand %p82_p1, %p79_p0 }
   0x6   :  { %87 = shalt.err (!%p84_p2)  }
   0x7   :  { %s162_s19 = smov [#allocation3]  }
   0x8   :  { %9 = dma.hbm_to_smem %s234_s0, 16, %s162_s19, [#allocation2] }
   0x9   :  { %154 = dma.done.wait [#allocation2], 16 }
   0xa   :  { %155 = vsyncadd [#allocation2], 4294967280 }
   0xb   :  { %11 = sfence }
   0xc   :  { %12 = vsyncpa [#allocation5], 0 }
   0xd   :  { %13 = vsyncpa [#allocation8], 0 }
   0xe   :  { %14 = vsyncpa [#allocation6], 0  ;;  %s163_s22 = smov [#allocation4]   ;;  %s164_s24 = smov [#allocation7]  }
   0xf   :  { %s21_s23 = sshll.u32 %s163_s22, 4  ;;  %s31_s25 = sshll.u32 %s164_s24, 4  ;;  %s22_s23 = int_to_ptr.vmem [resolvable:$true] %s21_s23  ;;  %s32_s25 = int_to_ptr.vmem [resolvable:$true] %s31_s25 }
  0x10   :  { %s88_s28 = scalar_lea.hbm %s235_s1, 256 }
  0x11   :  { %p89_p3 = scmp.ne.s32.totalorder %s235_s1, %s88_s28  ;;  %p92_p4 = scmp.lt.u32.totalorder %s88_s28, %s235_s1 }
  0x13   :  { %p94_p5 = pnand %p92_p4, %p89_p3 }
  0x15   :  { %97 = shalt.err (!%p94_p5)
}
  0x16   :  { %s98_s5 = scalar_lea.vmem %s22_s23, 256  ;;  %p103_p7 = scmp.lt.s32.totalorder %s22_s23, %s22_s23 }
  0x17   :  { %p99_p6 = scmp.ne.s32.totalorder %s22_s23, %s98_s5  ;;  %p104_p8 = scmp.lt.s32.totalorder %s98_s5, %s98_s5 }
  0x19   :  { %p105_p9 = por %p104_p8, %p103_p7 }
  0x1b   :  { %p106_p10 = pnand %p105_p9, %p99_p6 }
  0x1d   :  { %109 = shalt.err (!%p106_p10)
}
  0x1e   :  { %24 = dma.hbm_to_vmem [thread:$0]  %s235_s1, 256, %s22_s23, [#allocation5]  }
  0x1f   :  { %s110_s10 = scalar_lea.hbm %s236_s2, 256 }
  0x20   :  { %p111_p11 = scmp.ne.s32.totalorder %s236_s2, %s110_s10  ;;  %p114_p12 = scmp.lt.u32.totalorder %s110_s10, %s236_s2 }
  0x22   :  { %p116_p13 = pnand %p114_p12, %p111_p11 }
  0x24   :  { %119 = shalt.err (!%p116_p13)
}
  0x25   :  { %s120_s15 = scalar_lea.vmem %s32_s25, 256  ;;  %p125_p1 = scmp.lt.s32.totalorder %s32_s25, %s32_s25 }
  0x26   :  { %p121_p0 = scmp.ne.s32.totalorder %s32_s25, %s120_s15  ;;  %p126_p2 = scmp.lt.s32.totalorder %s120_s15, %s120_s15 }
  0x28   :  { %p127_p3 = por %p126_p2, %p125_p1 }
  0x2a   :  { %p128_p4 = pnand %p127_p3, %p121_p0 }
  0x2c   :  { %131 = shalt.err (!%p128_p4)
}
  0x2d   :  { %34 = dma.hbm_to_vmem [thread:$0]  %s236_s2, 256, %s32_s25, [#allocation8]  }
  0x2e   :  { %156 = dma.done.wait [#allocation5], 256  }
  0x2f   :  { %157 = vsyncadd [#allocation5], 4294967040 }
  0x30   :  { %158 = dma.done.wait [#allocation8], 256  }
  0x31   :  { %159 = vsyncadd [#allocation8], 4294967040  ;;  %s41_s17 = sld [smem:[#allocation3]]  ;;  %s73_s18 = sld [smem:[#allocation3 + $0x1]]  ;;  %v43_v0 = vld [vmem:[#allocation4] sm:$0xff]  ;;  %v45_v1 = vld [vmem:[#allocation7] sm:$0xff] }
  0x32   :  { %v44_v4 = vld [vmem:[#allocation4 + $0x8] sm:$0xff]  ;;  %v46_v7 = vld [vmem:[#allocation7 + $0x8] sm:$0xff]  ;;  %s165_s19 = smov [#allocation9]  }
  0x33   :  { %s63_s20 = sshll.u32 %s165_s19, 4  ;;  %s64_s20 = int_to_ptr.vmem [resolvable:$true] %s63_s20 }
  0x34   :  { %s132_s2 = scalar_lea.vmem %s64_s20, 256  ;;  %p137_p6 = scmp.lt.s32.totalorder %s64_s20, %s64_s20 }
  0x35   :  { %p133_p5 = scmp.ne.s32.totalorder %s64_s20, %s132_s2  ;;  %p138_p7 = scmp.lt.s32.totalorder %s132_s2, %s132_s2 }
  0x37   :  { %v47_v2 = vstv %s41_s17  ;;  %v50_v3 = vstv %s73_s18  ;;  %p139_p8 = por %p138_p7, %p137_p6 }
  0x38   :  { %v48_v5 = vmul.f32 %v47_v2, %v43_v0  ;;  %v51_v6 = vmul.f32 %v50_v3, %v45_v1  ;;  %v49_v8 = vmul.f32 %v47_v2, %v44_v4  ;;  %v52_v9 = vmul.f32 %v50_v3, %v46_v7 }
  0x39   :  { %p140_p9 = pnand %p139_p8, %p133_p5 }
  0x3a   :  { %v53_v10 = vadd.f32 %v51_v6, %v48_v5  ;;  %v54_v11 = vadd.f32 %v52_v9, %v49_v8 }
  0x3c   :  { %55 = vst [vmem:[#allocation9] sm:$0xff] %v53_v10  ;;  %56 = vst [vmem:[#allocation9 + $0x8] sm:$0xff] %v54_v11 }
  0x3d   :  { %143 = shalt.err (!%p140_p9)
}
  0x3e   :  { %s144_s23 = scalar_lea.hbm %s237_s3, 256 }
  0x3f   :  { %p145_p10 = scmp.ne.s32.totalorder %s237_s3, %s144_s23  ;;  %p148_p11 = scmp.lt.u32.totalorder %s144_s23, %s237_s3 }
  0x41   :  { %p150_p12 = pnand %p148_p11, %p145_p10 }
  0x43   :  { %153 = shalt.err (!%p150_p12)
}
  0x44   :  { %66 = dma.vmem_to_hbm [thread:$0]  %s64_s20, 256, %s237_s3, [#allocation6]  }
  0x45   :  { %160 = dma.done.wait [#allocation6], 256  }
  0x46   :  { %161 = vsyncadd [#allocation6], 4294967040 }
  0x47   :  { %70 = vsyncpa [#allocation5], 1 }
  0x48   :  { %71 = vsyncpa [#allocation8], 1 }
  0x49   :  { %72 = vsyncpa [#allocation6], 1 }

</bundles_post_ra>
